<compile_context>
chip_gen: v7x
topology: tpu7x:2x2x1
jax: 0.10.0
libtpu: 0.0.40
codegen_flags: <defaults>
</compile_context>

<pallas_src>
import functools

import jax
import jax.numpy as jnp
from jax.experimental import pallas as pl
from jax.experimental.pallas import tpu as pltpu


_C0 = 0.28209479177387814
_C1 = 0.4886025119029199
_C2 = [1.0925484305920792, -1.0925484305920792, 0.31539156525252005,
       -1.0925484305920792, 0.5462742152960396]
_C3 = [-0.5900435899266435, 2.890611442640554, -0.4570457994644658,
       0.3731763325901154, -0.4570457994644658, 1.445305721320277,
       -0.5900435899266435]
_C4 = [2.5033429417967046, -1.7701307697799304, 0.9461746957575601,
       -0.6690465435572892, 0.10578554691520431, -0.6690465435572892,
       0.47308734787878004, -1.7701307697799304, 0.6258357354491761]


def _sh_kernel(xyz_ref, o_ref, *, degree: int):
    # xyz_ref: (3, TR, C)          -- x/y/z components, lane-dense (TR, C) slabs.
    # o_ref:   (degree**2, TR, C)  -- one dense slab per SH channel.
    x = xyz_ref[0].astype(jnp.float32)
    y = xyz_ref[1].astype(jnp.float32)
    z = xyz_ref[2].astype(jnp.float32)
    dt = o_ref.dtype

    def put(k, val):
        # Unmasked, lane-dense store of one SH channel (static first-axis index).
        o_ref[k] = val.astype(dt)

    put(0, jnp.full_like(x, _C0))
    if degree > 1:
        put(1, -_C1 * y)
        put(2, _C1 * z)
        put(3, -_C1 * x)
        if degree > 2:
            xx, yy, zz = x * x, y * y, z * z
            xy, yz, xz = x * y, y * z, x * z
            put(4, _C2[0] * xy)
            put(5, _C2[1] * yz)
            put(6, _C2[2] * (2.0 * zz - xx - yy))
            put(7, _C2[3] * xz)
            put(8, _C2[4] * (xx - yy))
            if degree > 3:
                put(9, _C3[0] * y * (3.0 * xx - yy))
                put(10, _C3[1] * xy * z)
                put(11, _C3[2] * y * (4.0 * zz - xx - yy))
                put(12, _C3[3] * z * (2.0 * zz - 3.0 * xx - 3.0 * yy))
                put(13, _C3[4] * x * (4.0 * zz - xx - yy))
                put(14, _C3[5] * z * (xx - yy))
                put(15, _C3[6] * x * (xx - 3.0 * yy))
                if degree > 4:
                    put(16, _C4[0] * xy * (xx - yy))
                    put(17, _C4[1] * yz * (3.0 * xx - yy))
                    put(18, _C4[2] * xy * (7.0 * zz - 1.0))
                    put(19, _C4[3] * yz * (7.0 * zz - 3.0))
                    put(20, _C4[4] * (zz * (35.0 * zz - 30.0) + 3.0))
                    put(21, _C4[5] * xz * (7.0 * zz - 3.0))
                    put(22, _C4[6] * (xx - yy) * (7.0 * zz - 1.0))
                    put(23, _C4[7] * xz * (xx - 3.0 * yy))
                    put(24, _C4[8] * (xx * (xx - 3.0 * yy)
                                      - yy * (3.0 * xx - yy)))


def sh_encoder(x: jax.Array, degree: int, *, lane_tile: int = 2048) -> jax.Array:
    """Pallas implementation of SHEncoder.forward.

    x: float array of shape (..., 3). Returns (..., degree**2), same dtype.
    """
    assert 1 <= degree <= 5
    orig_shape = x.shape
    assert orig_shape[-1] == 3, "SHEncoder expects input_dim == 3"
    out_dim = degree * degree

    rows = 1
    for s in orig_shape[:-1]:
        rows *= s
    x2d = x.reshape(rows, 3)

    itemsize = jnp.dtype(x.dtype).itemsize
    # Sublane tile: 8 for 32-bit, 16 for 16-bit, 32 for 8-bit inputs.
    tr = max(8, 32 // itemsize)
    # Lane tile: multiple of 128. Default 2048 -> ~16K points per grid step for
    # f32 (amortizes ~0.35 us/step overhead); shrunk for small inputs so the
    # padding stays small.
    lane_tile = max(128, (lane_tile // 128) * 128)
    c_for_rows = pl.cdiv(pl.cdiv(rows, tr), 128) * 128
    c = max(128, min(lane_tile, c_for_rows))
    block_rows = tr * c

    pad = (-rows) % block_rows
    if pad:
        x2d = jnp.pad(x2d, ((0, pad), (0, 0)))
    rows_p = rows + pad
    g = rows_p // c  # number of sublane groups; multiple of tr by construction

    # Component-major, lane-dense view: comp[ci, gi, li] = coord ci of point gi*c+li.
    comp = jnp.transpose(x2d, (1, 0)).reshape(3, g, c)

    grid = (g // tr,)
    kernel = functools.partial(_sh_kernel, degree=degree)
    out_cm = pl.pallas_call(
        kernel,
        out_shape=jax.ShapeDtypeStruct((out_dim, g, c), x.dtype),
        grid_spec=pltpu.PrefetchScalarGridSpec(
            num_scalar_prefetch=0,
            grid=grid,
            in_specs=[pl.BlockSpec((3, tr, c), lambda i: (0, i, 0))],
            out_specs=pl.BlockSpec((out_dim, tr, c), lambda i: (0, i, 0)),
        ),
        compiler_params=pltpu.CompilerParams(
            dimension_semantics=("parallel",),
        ),
        cost_estimate=pl.CostEstimate(
            flops=4 * out_dim * rows_p,
            transcendentals=0,
            bytes_accessed=(3 + out_dim) * rows_p * itemsize,
        ),
    )(comp)

    # Channel-major -> row-major: one XLA transpose (wrapper layout plumbing).
    out = jnp.transpose(out_cm, (1, 2, 0)).reshape(rows_p, out_dim)
    if pad:
        out = out[:rows]
    return out.reshape(*orig_shape[:-1], out_dim)


def sh_encoder_ref(x: jax.Array, degree: int) -> jax.Array:
    """Pure-JAX reference matching the PyTorch module exactly."""
    xc, yc, zc = x[..., 0], x[..., 1], x[..., 2]
    comps = [jnp.full_like(xc, _C0)]
    if degree > 1:
        comps += [-_C1 * yc, _C1 * zc, -_C1 * xc]
        if degree > 2:
            xx, yy, zz = xc * xc, yc * yc, zc * zc
            xy, yz, xz = xc * yc, yc * zc, xc * zc
            comps += [_C2[0] * xy, _C2[1] * yz, _C2[2] * (2.0 * zz - xx - yy),
                      _C2[3] * xz, _C2[4] * (xx - yy)]
            if degree > 3:
                comps += [_C3[0] * yc * (3.0 * xx - yy),
                          _C3[1] * xy * zc,
                          _C3[2] * yc * (4.0 * zz - xx - yy),
                          _C3[3] * zc * (2.0 * zz - 3.0 * xx - 3.0 * yy),
                          _C3[4] * xc * (4.0 * zz - xx - yy),
                          _C3[5] * zc * (xx - yy),
                          _C3[6] * xc * (xx - 3.0 * yy)]
                if degree > 4:
                    comps += [_C4[0] * xy * (xx - yy),
                              _C4[1] * yz * (3.0 * xx - yy),
                              _C4[2] * xy * (7.0 * zz - 1.0),
                              _C4[3] * yz * (7.0 * zz - 3.0),
                              _C4[4] * (zz * (35.0 * zz - 30.0) + 3.0),
                              _C4[5] * xz * (7.0 * zz - 3.0),
                              _C4[6] * (xx - yy) * (7.0 * zz - 1.0),
                              _C4[7] * xz * (xx - 3.0 * yy),
                              _C4[8] * (xx * (xx - 3.0 * yy)
                                        - yy * (3.0 * xx - yy))]
    return jnp.stack(comps, axis=-1)


if __name__ == "__main__":
    key = jax.random.PRNGKey(0)
    # Small shape consistent with a direction encoder: (batch=2, seq=8, pts=16, 3)
    x = jax.random.normal(key, (2, 8, 16, 3), dtype=jnp.float32)
    x = x / jnp.linalg.norm(x, axis=-1, keepdims=True)  # unit view directions

    for degree in (1, 2, 3, 4, 5):
        out = sh_encoder(x, degree)
        out = jax.block_until_ready(out)
        ref = sh_encoder_ref(x, degree)
        assert out.shape == (2, 8, 16, degree * degree), out.shape
        assert jnp.allclose(out, ref, atol=1e-5, rtol=1e-5), f"mismatch deg={degree}"

    print("KERNEL_OK")
</pallas_src>

<mosaic_0001>
module attributes {stable_mosaic.version = 11 : i64} {
  func.func @_sh_kernel(%arg0: i32, %arg1: memref<3x8x128xf32, #tpu.memory_space<vmem>>, %arg2: memref<1x8x128xf32, #tpu.memory_space<vmem>>) attributes {dimension_semantics = [#tpu.dimension_semantics<parallel>], iteration_bounds = array<i64: 1>, scalar_prefetch = 0 : i64, scratch_operands = 0 : i64, tpu.core_type = #tpu.core_type<tc>, window_params = [{transform_indices = @transform_0, window_bounds = array<i64: 3, 8, 128>}, {transform_indices = @transform_1, window_bounds = array<i64: 1, 8, 128>}]} {
    %cst = arith.constant 0.282094806 : f32
    %0 = vector.broadcast %cst : f32 to vector<8x128xf32>
    %c0 = arith.constant 0 : index
    %c0_0 = arith.constant 0 : index
    %c0_1 = arith.constant 0 : index
    %1 = vector.load %arg2[%c0, %c0_0, %c0_1] : memref<1x8x128xf32, #tpu.memory_space<vmem>>, vector<1x8x128xf32>
    %2 = vector.shape_cast %1 : vector<1x8x128xf32> to vector<8x128xf32>
    %3 = vector.shape_cast %0 : vector<8x128xf32> to vector<1x8x128xf32>
    tpu.vector_store %arg2[%c0, %c0_0, %c0_1], %3 {strides = array<i32>} : memref<1x8x128xf32, #tpu.memory_space<vmem>>, vector<1x8x128xf32>,
    return
  }
  func.func @transform_0(%arg0: i32) -> (i32, i32, i32) {
    %c0_i32 = arith.constant 0 : i32
    %c0_i32_0 = arith.constant 0 : i32
    %c0_i32_1 = arith.constant 0 : i32
    return %c0_i32, %arg0, %c0_i32_0 : i32, i32, i32
  }
  func.func @transform_1(%arg0: i32) -> (i32, i32, i32) {
    %c0_i32 = arith.constant 0 : i32
    %c0_i32_0 = arith.constant 0 : i32
    %c0_i32_1 = arith.constant 0 : i32
    return %c0_i32, %arg0, %c0_i32_0 : i32, i32, i32
  }
}

</mosaic_0001>

<bundles_post_ra>
// kernel: tpu_custom_call.1
= control target key start
LH: loop header
LB: loop body
LE: loop exit
PB: predicated region body
PF: predicated region fallthrough
CT: control target
= control target key end

     0   :  { %6 = vsyncpa [#allocation3], 0  ;;  %s131_s0 = inlined_call_operand.hbm [shape: f32[3,8,128], index: 0, kind: input, shape index: {}]   ;;  %s132_s1 = inlined_call_operand.hbm [shape: f32[1,8,128], index: 1, kind: output, shape index: {}]  }
   0x1   :  { %7 = vsyncpa [#allocation4], 0  ;;  %s92_s6 = smov [#allocation2]   ;;  %s44_s10 = scalar_lea.hbm %s131_s0, 384 }
   0x2   :  { %s13_s7 = sshll.u32 %s92_s6, 4  ;;  %p45_p0 = scmp.ne.s32.totalorder %s131_s0, %s44_s10  ;;  %s14_s7 = int_to_ptr.vmem [resolvable:$true] %s13_s7 }
   0x3   :  { %p48_p1 = scmp.lt.u32.totalorder %s44_s10, %s131_s0 }
   0x5   :  { %p50_p2 = pnand %p48_p1, %p45_p0 }
   0x7   :  { %53 = shalt.err (!%p50_p2)
}
   0x8   :  { %s54_s15 = scalar_lea.vmem %s14_s7, 384  ;;  %p59_p4 = scmp.lt.s32.totalorder %s14_s7, %s14_s7 }
   0x9   :  { %p55_p3 = scmp.ne.s32.totalorder %s14_s7, %s54_s15  ;;  %p60_p5 = scmp.lt.s32.totalorder %s54_s15, %s54_s15 }
   0xb   :  { %p61_p6 = por %p60_p5, %p59_p4 }
   0xd   :  { %p62_p7 = pnand %p61_p6, %p55_p3 }
   0xf   :  { %65 = shalt.err (!%p62_p7)
}
  0x10   :  { %s93_s16 = smov 128   ;;  %s94_s17 = smov 8  }
  0x11   :  { %19 = dma.hbm_to_vmem [thread:$0]  %s131_s0, 384, %s14_s7, [#allocation3], %s93_s16, %s93_s16, %s94_s17  }
  0x12   :  { %88 = dma.done.wait [#allocation3], 384  }
  0x13   :  { %89 = vsyncadd [#allocation3], 4294966912  ;;  %v95_v0 = vmov 0.2820948   ;;  %s96_s20 = smov [#allocation5]  }
  0x14   :  { %23 = vst [vmem:[#allocation5] sm:$0xff] %v95_v0  ;;  %s30_s21 = sshll.u32 %s96_s20, 4  ;;  %s31_s21 = int_to_ptr.vmem [resolvable:$true] %s30_s21 }
  0x15   :  { %s66_s22 = scalar_lea.vmem %s31_s21, 128  ;;  %p71_p9 = scmp.lt.s32.totalorder %s31_s21, %s31_s21 }
  0x16   :  { %p67_p8 = scmp.ne.s32.totalorder %s31_s21, %s66_s22  ;;  %p72_p10 = scmp.lt.s32.totalorder %s66_s22, %s66_s22 }
  0x18   :  { %p73_p11 = por %p72_p10, %p71_p9 }
  0x1a   :  { %p74_p12 = pnand %p73_p11, %p67_p8 }
  0x1c   :  { %77 = shalt.err (!%p74_p12)
}
  0x1d   :  { %s78_s25 = scalar_lea.hbm %s132_s1, 128 }
  0x1e   :  { %p79_p13 = scmp.ne.s32.totalorder %s132_s1, %s78_s25  ;;  %p82_p0 = scmp.lt.u32.totalorder %s78_s25, %s132_s1 }
  0x20   :  { %p84_p1 = pnand %p82_p0, %p79_p13 }
  0x22   :  { %87 = shalt.err (!%p84_p1)
}
  0x23   :  { %33 = dma.vmem_to_hbm [thread:$0]  %s31_s21, 128, %s132_s1, [#allocation4]  }
  0x24   :  { %90 = dma.done.wait [#allocation4], 128  }
  0x25   :  { %91 = vsyncadd [#allocation4], 4294967168 }
  0x26   :  { %37 = vsyncpa [#allocation3], 1 }
  0x27   :  { %38 = vsyncpa [#allocation4], 1 }

</bundles_post_ra>
